<compile_context>
chip_gen: v7x
topology: tpu7x:2x2x1
jax: 0.10.0
libtpu: 0.0.40
codegen_flags: <defaults>
</compile_context>

<pallas_src>
import jax
import jax.numpy as jnp
from jax.experimental import pallas as pl
from jax.experimental.pallas import tpu as pltpu

INPUT_DIM = 30
LATENT_DIM = 20
HIDDEN_DIM = 128

LANES = 128          # lane width / padded feature dim
N_W_BLOCKS = 5       # [ W1 | W2_mean | W2_logvar | W3 | W4 ]


def _round_up(n, m):
    return ((n + m - 1) // m) * m


def vae_kernel(x_ref, eps_ref, w_ref, b_ref, out_ref):
    """One batch tile of the full VAE forward.

    x_ref   : [bt, 128]    input, lanes >= 30 are zero
    eps_ref : [bt, 128]    reparam noise, lanes >= 20 are zero
    w_ref   : [128, 640]   packed, zero-padded weights [W1|W2_mean|W2_logvar|W3|W4]
    b_ref   : [8, 128]     packed biases, rows: b1, b2_mean, b2_logvar, b3, b4
    out_ref : [4, bt, 128] packed outputs, planes: x_rec, mean, logvar, z
    """
    x = x_ref[...]
    eps = eps_ref[...]

    w1 = w_ref[:, 0:128]      # [128,128], rows >= 30 are zero
    w2 = w_ref[:, 128:384]    # [128,256], fused mean|logvar head
    w3 = w_ref[:, 384:512]    # [128,128], rows >= 20 are zero
    w4 = w_ref[:, 512:640]    # [128,128], cols >= 30 are zero

    b1 = b_ref[0:1, :]
    b2m = b_ref[1:2, :]
    b2l = b_ref[2:3, :]
    b3 = b_ref[3:4, :]
    b4 = b_ref[4:5, :]

    # encode: h = relu(fc1(x))
    h = jnp.maximum(jnp.dot(x, w1, preferred_element_type=jnp.float32) + b1, 0.0)

    # fused mean/logvar head: one MXU push, then 128-lane-aligned slices.
    ml = jnp.dot(h, w2, preferred_element_type=jnp.float32)      # [bt, 256]
    mean = ml[:, 0:128] + b2m       # pad lanes (>=20) stay exactly 0
    logvar = ml[:, 128:256] + b2l   # pad lanes (>=20) stay exactly 0

    # reparameterize: z = mean + eps * exp(0.5 * logvar)
    # pad lanes: mean=0, eps=0, exp(0)=1  ->  z pad lanes stay exactly 0
    z = mean + eps * jnp.exp(0.5 * logvar)

    # decode: x_rec = sigmoid(fc4(relu(fc3(z))))
    h2 = jnp.maximum(jnp.dot(z, w3, preferred_element_type=jnp.float32) + b3, 0.0)
    x_rec = jax.nn.sigmoid(jnp.dot(h2, w4, preferred_element_type=jnp.float32) + b4)

    # lane-dense packed output slab: unmasked 128-lane stores, one writeback DMA.
    out_ref[0] = x_rec
    out_ref[1] = mean
    out_ref[2] = logvar
    out_ref[3] = z


def _pad_rows_cols(a, rows, cols):
    return jnp.zeros((rows, cols), a.dtype).at[: a.shape[0], : a.shape[1]].set(a)


def vae_forward(x, packed_params, eps, *, btile=512):
    """x: [B, 30] f32, eps: [B, 20] f32 (the randn_like noise)."""
    w_packed, b_packed = packed_params
    B = x.shape[0]
    bt = min(btile, _round_up(B, 8))        # batch tile, multiple of 8 (f32 sublane)
    b_pad = _round_up(B, bt)

    x_p = _pad_rows_cols(x.astype(jnp.float32), b_pad, LANES)
    eps_p = _pad_rows_cols(eps.astype(jnp.float32), b_pad, LANES)

    out = pl.pallas_call(
        vae_kernel,
        out_shape=jax.ShapeDtypeStruct((4, b_pad, LANES), jnp.float32),
        grid_spec=pltpu.PrefetchScalarGridSpec(
            num_scalar_prefetch=0,
            grid=(b_pad // bt,),
            in_specs=[
                pl.BlockSpec((bt, LANES), lambda i: (i, 0)),                   # x tile
                pl.BlockSpec((bt, LANES), lambda i: (i, 0)),                   # eps tile
                pl.BlockSpec((LANES, N_W_BLOCKS * LANES), lambda i: (0, 0)),   # weights (resident)
                pl.BlockSpec((8, LANES), lambda i: (0, 0)),                    # biases (resident)
            ],
            out_specs=pl.BlockSpec((4, bt, LANES), lambda i: (0, i, 0)),
        ),
        compiler_params=pltpu.CompilerParams(
            dimension_semantics=("parallel",),
            vmem_limit_bytes=32 * 1024 * 1024,
        ),
    )(x_p, eps_p, w_packed, b_packed)

    x_rec = out[0, :B, :INPUT_DIM]
    mean = out[1, :B, :LATENT_DIM]
    logvar = out[2, :B, :LATENT_DIM]
    z = out[3, :B, :LATENT_DIM]
    return x_rec, mean, logvar, z


def init_params(key):
    """Deterministic init mirroring the PyTorch module's Linear layers.
    Weights stored as [in, out]; biases as [1, out]."""
    ks = jax.random.split(key, 10)

    def linear(kw, kb, fan_in, fan_out):
        bound = 1.0 / jnp.sqrt(fan_in)
        w = jax.random.uniform(kw, (fan_in, fan_out), jnp.float32, -bound, bound)
        b = jax.random.uniform(kb, (1, fan_out), jnp.float32, -bound, bound)
        return w, b

    w1, b1 = linear(ks[0], ks[1], INPUT_DIM, HIDDEN_DIM)      # fc1
    w2m, b2m = linear(ks[2], ks[3], HIDDEN_DIM, LATENT_DIM)   # fc2_mean
    w2l, b2l = linear(ks[4], ks[5], HIDDEN_DIM, LATENT_DIM)   # fc2_logvar
    w3, b3 = linear(ks[6], ks[7], LATENT_DIM, HIDDEN_DIM)     # fc3
    w4, b4 = linear(ks[8], ks[9], HIDDEN_DIM, INPUT_DIM)      # fc4
    return (w1, b1, w2m, b2m, w2l, b2l, w3, b3, w4, b4)


def pack_params(params):
    """Offline packing: one zero-padded [128, 640] weight blob + one [8, 128] bias blob."""
    w1, b1, w2m, b2m, w2l, b2l, w3, b3, w4, b4 = params
    W = jnp.zeros((LANES, N_W_BLOCKS * LANES), jnp.float32)
    W = W.at[:INPUT_DIM, 0:HIDDEN_DIM].set(w1)
    W = W.at[:HIDDEN_DIM, 128:128 + LATENT_DIM].set(w2m)
    W = W.at[:HIDDEN_DIM, 256:256 + LATENT_DIM].set(w2l)
    W = W.at[:LATENT_DIM, 384:384 + HIDDEN_DIM].set(w3)
    W = W.at[:HIDDEN_DIM, 512:512 + INPUT_DIM].set(w4)

    Bv = jnp.zeros((8, LANES), jnp.float32)
    Bv = Bv.at[0, :HIDDEN_DIM].set(b1.reshape(-1))
    Bv = Bv.at[1, :LATENT_DIM].set(b2m.reshape(-1))
    Bv = Bv.at[2, :LATENT_DIM].set(b2l.reshape(-1))
    Bv = Bv.at[3, :HIDDEN_DIM].set(b3.reshape(-1))
    Bv = Bv.at[4, :INPUT_DIM].set(b4.reshape(-1))
    return W, Bv


def vae_ref(x, params, eps):
    """Pure-JAX reference of the same forward pass (unpacked params)."""
    w1, b1, w2m, b2m, w2l, b2l, w3, b3, w4, b4 = params
    h = jnp.maximum(x @ w1 + b1, 0.0)
    mean = h @ w2m + b2m
    logvar = h @ w2l + b2l
    z = mean + eps * jnp.exp(0.5 * logvar)
    h2 = jnp.maximum(z @ w3 + b3, 0.0)
    x_rec = jax.nn.sigmoid(h2 @ w4 + b4)
    return x_rec, mean, logvar, z


if __name__ == "__main__":
    key = jax.random.PRNGKey(0)
    k_params, k_x, k_eps, k_x2, k_eps2 = jax.random.split(key, 5)

    params = init_params(k_params)
    packed = pack_params(params)

    # TODO(synk): eps (torch.randn_like in reparameterize) is drawn outside and passed
    # in for deterministic parity with the reference, rather than via pltpu.prng_* in-kernel.

    # Small batch: single grid step.
    B = 8
    x = jax.random.normal(k_x, (B, INPUT_DIM), jnp.float32)
    eps = jax.random.normal(k_eps, (B, LATENT_DIM), jnp.float32)
    outs = jax.block_until_ready(vae_forward(x, packed, eps))
    refs = vae_ref(x, params, eps)
    for o, r in zip(outs, refs):
        assert o.shape == r.shape and o.dtype == r.dtype
        assert jnp.allclose(o, r, atol=2e-5, rtol=2e-5), "mismatch vs reference (B=8)"

    # Slightly larger batch exercising the batch-tiled 'parallel' grid (grid=(3,)).
    B2, BT2 = 40, 16
    x2 = jax.random.normal(k_x2, (B2, INPUT_DIM), jnp.float32)
    eps2 = jax.random.normal(k_eps2, (B2, LATENT_DIM), jnp.float32)
    outs2 = jax.block_until_ready(vae_forward(x2, packed, eps2, btile=BT2))
    refs2 = vae_ref(x2, params, eps2)
    for o, r in zip(outs2, refs2):
        assert o.shape == r.shape and o.dtype == r.dtype
        assert jnp.allclose(o, r, atol=2e-5, rtol=2e-5), "mismatch vs reference (B=40)"

    print("KERNEL_OK")
</pallas_src>

<mosaic_0001>
module attributes {stable_mosaic.version = 11 : i64} {
  func.func @vae_kernel(%arg0: i32, %arg1: memref<8x128xf32, #tpu.memory_space<vmem>>, %arg2: memref<8x128xf32, #tpu.memory_space<vmem>>, %arg3: memref<128x640xf32, #tpu.memory_space<vmem>>, %arg4: memref<8x128xf32, #tpu.memory_space<vmem>>, %arg5: memref<4x8x128xf32, #tpu.memory_space<vmem>>) attributes {dimension_semantics = [#tpu.dimension_semantics<parallel>], iteration_bounds = array<i64: 1>, scalar_prefetch = 0 : i64, scratch_operands = 0 : i64, tpu.core_type = #tpu.core_type<tc>, window_params = [{transform_indices = @transform_0, window_bounds = array<i64: 8, 128>}, {transform_indices = @transform_1, window_bounds = array<i64: 8, 128>}, {pipeline_mode = #tpu.pipeline_mode<synchronous>, transform_indices = @transform_2, window_bounds = array<i64: 128, 640>}, {pipeline_mode = #tpu.pipeline_mode<synchronous>, transform_indices = @transform_3, window_bounds = array<i64: 8, 128>}, {transform_indices = @transform_4, window_bounds = array<i64: 4, 8, 128>}]} {
    %c0 = arith.constant 0 : index
    %c0_0 = arith.constant 0 : index
    %0 = vector.load %arg1[%c0, %c0_0] : memref<8x128xf32, #tpu.memory_space<vmem>>, vector<8x128xf32>
    %c0_1 = arith.constant 0 : index
    %c0_2 = arith.constant 0 : index
    %1 = vector.load %arg2[%c0_1, %c0_2] : memref<8x128xf32, #tpu.memory_space<vmem>>, vector<8x128xf32>
    %c0_3 = arith.constant 0 : index
    %c0_4 = arith.constant 0 : index
    %2 = vector.load %arg3[%c0_3, %c0_4] : memref<128x640xf32, #tpu.memory_space<vmem>>, vector<128x128xf32>
    %c0_5 = arith.constant 0 : index
    %c128 = arith.constant 128 : index
    %3 = vector.load %arg3[%c0_5, %c128] : memref<128x640xf32, #tpu.memory_space<vmem>>, vector<128x256xf32>
    %c0_6 = arith.constant 0 : index
    %c384 = arith.constant 384 : index
    %4 = vector.load %arg3[%c0_6, %c384] : memref<128x640xf32, #tpu.memory_space<vmem>>, vector<128x128xf32>
    %c0_7 = arith.constant 0 : index
    %c512 = arith.constant 512 : index
    %5 = vector.load %arg3[%c0_7, %c512] : memref<128x640xf32, #tpu.memory_space<vmem>>, vector<128x128xf32>
    %c0_8 = arith.constant 0 : index
    %c0_9 = arith.constant 0 : index
    %6 = vector.load %arg4[%c0_8, %c0_9] : memref<8x128xf32, #tpu.memory_space<vmem>>, vector<1x128xf32>
    %c1 = arith.constant 1 : index
    %c0_10 = arith.constant 0 : index
    %7 = vector.load %arg4[%c1, %c0_10] : memref<8x128xf32, #tpu.memory_space<vmem>>, vector<1x128xf32>
    %c2 = arith.constant 2 : index
    %c0_11 = arith.constant 0 : index
    %8 = vector.load %arg4[%c2, %c0_11] : memref<8x128xf32, #tpu.memory_space<vmem>>, vector<1x128xf32>
    %c3 = arith.constant 3 : index
    %c0_12 = arith.constant 0 : index
    %9 = vector.load %arg4[%c3, %c0_12] : memref<8x128xf32, #tpu.memory_space<vmem>>, vector<1x128xf32>
    %c4 = arith.constant 4 : index
    %c0_13 = arith.constant 0 : index
    %10 = vector.load %arg4[%c4, %c0_13] : memref<8x128xf32, #tpu.memory_space<vmem>>, vector<1x128xf32>
    %cst = arith.constant dense<0.000000e+00> : vector<8x128xf32>
    %11 = tpu.matmul %0, %2, %cst {dimension_numbers = #tpu.dot_dimension_numbers<[1], [0], [0], [1], [0, 0, 1, 1], [], []>} : vector<8x128xf32>, vector<128x128xf32>, vector<8x128xf32> -> vector<8x128xf32>
    %12 = vector.broadcast %6 : vector<1x128xf32> to vector<8x128xf32>
    %13 = arith.addf %11, %12 : vector<8x128xf32>
    %cst_14 = arith.constant 0.000000e+00 : f32
    %14 = vector.broadcast %cst_14 : f32 to vector<8x128xf32>
    %15 = arith.maximumf %13, %14 : vector<8x128xf32>
    %cst_15 = arith.constant dense<0.000000e+00> : vector<8x256xf32>
    %16 = tpu.matmul %15, %3, %cst_15 {dimension_numbers = #tpu.dot_dimension_numbers<[1], [0], [0], [1], [0, 0, 1, 1], [], []>} : vector<8x128xf32>, vector<128x256xf32>, vector<8x256xf32> -> vector<8x256xf32>
    %17 = vector.extract_strided_slice %16 {offsets = [0, 0], sizes = [8, 128], strides = [1, 1]} : vector<8x256xf32> to vector<8x128xf32>
    %18 = vector.broadcast %7 : vector<1x128xf32> to vector<8x128xf32>
    %19 = arith.addf %17, %18 : vector<8x128xf32>
    %20 = vector.extract_strided_slice %16 {offsets = [0, 128], sizes = [8, 128], strides = [1, 1]} : vector<8x256xf32> to vector<8x128xf32>
    %21 = vector.broadcast %8 : vector<1x128xf32> to vector<8x128xf32>
    %22 = arith.addf %20, %21 : vector<8x128xf32>
    %cst_16 = arith.constant 5.000000e-01 : f32
    %23 = vector.broadcast %cst_16 : f32 to vector<8x128xf32>
    %24 = arith.mulf %23, %22 : vector<8x128xf32>
    %25 = math.exp %24 : vector<8x128xf32>
    %26 = arith.mulf %1, %25 : vector<8x128xf32>
    %27 = arith.addf %19, %26 : vector<8x128xf32>
    %cst_17 = arith.constant dense<0.000000e+00> : vector<8x128xf32>
    %28 = tpu.matmul %27, %4, %cst_17 {dimension_numbers = #tpu.dot_dimension_numbers<[1], [0], [0], [1], [0, 0, 1, 1], [], []>} : vector<8x128xf32>, vector<128x128xf32>, vector<8x128xf32> -> vector<8x128xf32>
    %29 = vector.broadcast %9 : vector<1x128xf32> to vector<8x128xf32>
    %30 = arith.addf %28, %29 : vector<8x128xf32>
    %cst_18 = arith.constant 0.000000e+00 : f32
    %31 = vector.broadcast %cst_18 : f32 to vector<8x128xf32>
    %32 = arith.maximumf %30, %31 : vector<8x128xf32>
    %cst_19 = arith.constant dense<0.000000e+00> : vector<8x128xf32>
    %33 = tpu.matmul %32, %5, %cst_19 {dimension_numbers = #tpu.dot_dimension_numbers<[1], [0], [0], [1], [0, 0, 1, 1], [], []>} : vector<8x128xf32>, vector<128x128xf32>, vector<8x128xf32> -> vector<8x128xf32>
    %34 = vector.broadcast %10 : vector<1x128xf32> to vector<8x128xf32>
    %35 = arith.addf %33, %34 : vector<8x128xf32>
    %36 = arith.negf %35 : vector<8x128xf32>
    %37 = math.exp %36 : vector<8x128xf32>
    %cst_20 = arith.constant 1.000000e+00 : f32
    %38 = vector.broadcast %cst_20 : f32 to vector<8x128xf32>
    %39 = arith.addf %38, %37 : vector<8x128xf32>
    %40 = arith.divf %38, %39 : vector<8x128xf32>
    %c0_21 = arith.constant 0 : index
    %c0_22 = arith.constant 0 : index
    %c0_23 = arith.constant 0 : index
    %41 = vector.load %arg5[%c0_21, %c0_22, %c0_23] : memref<4x8x128xf32, #tpu.memory_space<vmem>>, vector<1x8x128xf32>
    %42 = vector.shape_cast %41 : vector<1x8x128xf32> to vector<8x128xf32>
    %43 = vector.shape_cast %40 : vector<8x128xf32> to vector<1x8x128xf32>
    tpu.vector_store %arg5[%c0_21, %c0_22, %c0_23], %43 {strides = array<i32>} : memref<4x8x128xf32, #tpu.memory_space<vmem>>, vector<1x8x128xf32>,
    %c1_24 = arith.constant 1 : index
    %c0_25 = arith.constant 0 : index
    %c0_26 = arith.constant 0 : index
    %44 = vector.load %arg5[%c1_24, %c0_25, %c0_26] : memref<4x8x128xf32, #tpu.memory_space<vmem>>, vector<1x8x128xf32>
    %45 = vector.shape_cast %44 : vector<1x8x128xf32> to vector<8x128xf32>
    %46 = vector.shape_cast %19 : vector<8x128xf32> to vector<1x8x128xf32>
    tpu.vector_store %arg5[%c1_24, %c0_25, %c0_26], %46 {strides = array<i32>} : memref<4x8x128xf32, #tpu.memory_space<vmem>>, vector<1x8x128xf32>,
    %c2_27 = arith.constant 2 : index
    %c0_28 = arith.constant 0 : index
    %c0_29 = arith.constant 0 : index
    %47 = vector.load %arg5[%c2_27, %c0_28, %c0_29] : memref<4x8x128xf32, #tpu.memory_space<vmem>>, vector<1x8x128xf32>
    %48 = vector.shape_cast %47 : vector<1x8x128xf32> to vector<8x128xf32>
    %49 = vector.shape_cast %22 : vector<8x128xf32> to vector<1x8x128xf32>
    tpu.vector_store %arg5[%c2_27, %c0_28, %c0_29], %49 {strides = array<i32>} : memref<4x8x128xf32, #tpu.memory_space<vmem>>, vector<1x8x128xf32>,
    %c3_30 = arith.constant 3 : index
    %c0_31 = arith.constant 0 : index
    %c0_32 = arith.constant 0 : index
    %50 = vector.load %arg5[%c3_30, %c0_31, %c0_32] : memref<4x8x128xf32, #tpu.memory_space<vmem>>, vector<1x8x128xf32>
    %51 = vector.shape_cast %50 : vector<1x8x128xf32> to vector<8x128xf32>
    %52 = vector.shape_cast %27 : vector<8x128xf32> to vector<1x8x128xf32>
    tpu.vector_store %arg5[%c3_30, %c0_31, %c0_32], %52 {strides = array<i32>} : memref<4x8x128xf32, #tpu.memory_space<vmem>>, vector<1x8x128xf32>,
    return
  }
  func.func @transform_0(%arg0: i32) -> (i32, i32) {
    %c0_i32 = arith.constant 0 : i32
    %c0_i32_0 = arith.constant 0 : i32
    return %arg0, %c0_i32 : i32, i32
  }
  func.func @transform_1(%arg0: i32) -> (i32, i32) {
    %c0_i32 = arith.constant 0 : i32
    %c0_i32_0 = arith.constant 0 : i32
    return %arg0, %c0_i32 : i32, i32
  }
  func.func @transform_2(%arg0: i32) -> (i32, i32) {
    %c0_i32 = arith.constant 0 : i32
    %c0_i32_0 = arith.constant 0 : i32
    %c0_i32_1 = arith.constant 0 : i32
    return %c0_i32, %c0_i32_0 : i32, i32
  }
  func.func @transform_3(%arg0: i32) -> (i32, i32) {
    %c0_i32 = arith.constant 0 : i32
    %c0_i32_0 = arith.constant 0 : i32
    %c0_i32_1 = arith.constant 0 : i32
    return %c0_i32, %c0_i32_0 : i32, i32
  }
  func.func @transform_4(%arg0: i32) -> (i32, i32, i32) {
    %c0_i32 = arith.constant 0 : i32
    %c0_i32_0 = arith.constant 0 : i32
    %c0_i32_1 = arith.constant 0 : i32
    return %c0_i32, %arg0, %c0_i32_0 : i32, i32, i32
  }
}

</mosaic_0001>

<bundles_post_ra>
// kernel: tpu_custom_call.1
= control target key start
LH: loop header
LB: loop body
LE: loop exit
PB: predicated region body
PF: predicated region fallthrough
CT: control target
= control target key end

     0   :  { %9 = vsyncpa [#allocation3], 0  ;;  %s990_s0 = inlined_call_operand.hbm [shape: f32[8,128], index: 0, kind: input, shape index: {}]   ;;  %s991_s1 = inlined_call_operand.hbm [shape: f32[8,128], index: 1, kind: input, shape index: {}]   ;;  %s992_s2 = inlined_call_operand.hbm [shape: f32[128,640], index: 2, kind: input, shape index: {}]   ;;  %s993_s3 = inlined_call_operand.vmem [shape: f32[8,128], index: 3, kind: input, shape index: {}]   ;;  %s994_s4 = inlined_call_operand.hbm [shape: f32[4,8,128], index: 4, kind: output, shape index: {}]  }
   0x1   :  { %10 = vsyncpa [#allocation6], 0 }
   0x2   :  { %11 = vsyncpa [#allocation4], 0  ;;  %s860_s15 = smov [#allocation5]   ;;  %s861_s17 = smov [#allocation2]  }
   0x3   :  { %s28_s16 = sshll.u32 %s860_s15, 4  ;;  %s18_s18 = sshll.u32 %s861_s17, 4  ;;  %s29_s16 = int_to_ptr.vmem [resolvable:$true] %s28_s16  ;;  %s19_s18 = int_to_ptr.vmem [resolvable:$true] %s18_s18 }
   0x4   :  { %s766_s21 = scalar_lea.hbm %s991_s1, 128 }
   0x5   :  { %p767_p0 = scmp.ne.s32.totalorder %s991_s1, %s766_s21  ;;  %p770_p1 = scmp.lt.u32.totalorder %s766_s21, %s991_s1 }
   0x7   :  { %p772_p2 = pnand %p770_p1, %p767_p0 }
   0x9   :  { %775 = shalt.err (!%p772_p2)
}
   0xa   :  { %s776_s26 = scalar_lea.vmem %s29_s16, 128  ;;  %p781_p4 = scmp.lt.s32.totalorder %s29_s16, %s29_s16 }
   0xb   :  { %p777_p3 = scmp.ne.s32.totalorder %s29_s16, %s776_s26  ;;  %p782_p5 = scmp.lt.s32.totalorder %s776_s26, %s776_s26 }
   0xd   :  { %p783_p6 = por %p782_p5, %p781_p4 }
   0xf   :  { %p784_p7 = pnand %p783_p6, %p777_p3 }
  0x11   :  { %787 = shalt.err (!%p784_p7)
}
  0x12   :  { %31 = dma.hbm_to_vmem [thread:$0]  %s991_s1, 128, %s29_s16, [#allocation6]  }
  0x13   :  { %s788_s5 = scalar_lea.hbm %s990_s0, 128 }
  0x14   :  { %p789_p8 = scmp.ne.s32.totalorder %s990_s0, %s788_s5  ;;  %p792_p9 = scmp.lt.u32.totalorder %s788_s5, %s990_s0 }
  0x16   :  { %p794_p10 = pnand %p792_p9, %p789_p8 }
  0x18   :  { %797 = shalt.err (!%p794_p10)
}
  0x19   :  { %s798_s10 = scalar_lea.vmem %s19_s18, 128  ;;  %p803_p12 = scmp.lt.s32.totalorder %s19_s18, %s19_s18 }
  0x1a   :  { %p799_p11 = scmp.ne.s32.totalorder %s19_s18, %s798_s10  ;;  %p804_p13 = scmp.lt.s32.totalorder %s798_s10, %s798_s10 }
  0x1c   :  { %p805_p0 = por %p804_p13, %p803_p12 }
  0x1e   :  { %p806_p1 = pnand %p805_p0, %p799_p11 }
  0x20   :  { %809 = shalt.err (!%p806_p1)
}
  0x21   :  { %21 = dma.hbm_to_vmem [thread:$0]  %s990_s0, 128, %s19_s18, [#allocation3]  }
  0x22   :  { %s862_s12 = smov [#allocation7]   ;;  %s810_s16 = scalar_lea.hbm %s992_s2, 10240 }
  0x23   :  { %s37_s13 = sshll.u32 %s862_s12, 4  ;;  %p811_p2 = scmp.ne.s32.totalorder %s992_s2, %s810_s16  ;;  %s38_s13 = int_to_ptr.vmem [resolvable:$true] %s37_s13 }
  0x24   :  { %p814_p3 = scmp.lt.u32.totalorder %s810_s16, %s992_s2 }
  0x26   :  { %p816_p4 = pnand %p814_p3, %p811_p2 }
  0x28   :  { %819 = shalt.err (!%p816_p4)
}
  0x29   :  { %s820_s22 = scalar_lea.vmem %s38_s13, 10240  ;;  %p825_p6 = scmp.lt.s32.totalorder %s38_s13, %s38_s13 }
  0x2a   :  { %p821_p5 = scmp.ne.s32.totalorder %s38_s13, %s820_s22  ;;  %p826_p7 = scmp.lt.s32.totalorder %s820_s22, %s820_s22 }
  0x2c   :  { %p827_p8 = por %p826_p7, %p825_p6 }
  0x2e   :  { %p828_p9 = pnand %p827_p8, %p821_p5 }
  0x30   :  { %831 = shalt.err (!%p828_p9)
}
  0x31   :  { %s863_s0 = smov 640   ;;  %s864_s18 = smov 40  }
  0x32   :  { %43 = dma.hbm_to_vmem [thread:$0]  %s992_s2, 10240, %s38_s13, [#allocation6], %s863_s0, %s863_s0, %s864_s18  }
  0x33   :  { %854 = dma.done.wait [#allocation3], 128  }
  0x34   :  { %855 = vsyncadd [#allocation3], 4294967168 }
  0x35   :  { %856 = dma.done.wait [#allocation6], 10368  }
  0x36   :  { %857 = vsyncadd [#allocation6], 4294956928  ;;  %v865_v0 = vmov 0.0|0.0   ;;  %vm866_vm0 = vmmov 0   ;;  %v867_v1 = vmov 0.0   ;;  %v57_v2 = vld [vmem:[#allocation7] sm:$0xff] }
  0x37   :  { %645 = vmatprep.subr.bf16.mxu0 %v865_v0  ;;  %572 = vmatprep.mubr.msk.f32.mxu0 %vm866_vm0, %v867_v1  ;;  %v58_v3 = vld [vmem:[#allocation7 + $0x28] sm:$0xff]  ;;  %v59_v4 = vld [vmem:[#allocation7 + $0x50] sm:$0xff]  ;;  %v60_v6 = vld [vmem:[#allocation7 + $0x78] sm:$0xff]  ;;  %s868_s8 = smov [#allocation8]  }
  0x38   :  { %281 = vmatprep.mubr.f32.mxu1 %v867_v1  ;;  %v646_v5 = vpack.c.bf16 %v58_v3, %v57_v2  ;;  %v649_v7 = vpack.c.bf16 %v60_v6, %v59_v4  ;;  %v61_v8 = vld [vmem:[#allocation7 + $0xa0] sm:$0xff]  ;;  %v62_v9 = vld [vmem:[#allocation7 + $0xc8] sm:$0xff]  ;;  %v74_v10 = vld [vmem:[#allocation7 + $0x10] sm:$0xff]  ;;  %s470_s9 = sshll.u32 %s868_s8, 4  ;;  %s471_s9 = int_to_ptr.vmem [resolvable:$true] %s470_s9 }
  0x39   :  { %v63_v11 = vld [vmem:[#allocation7 + $0xf0] sm:$0xff]  ;;  %v64_v12 = vld [vmem:[#allocation7 + $0x118] sm:$0xff]  ;;  %v73_v14 = vld [vmem:[#allocation7 + $0x8] sm:$0xff]  ;;  %v652_v16 = vpack.c.bf16 %v62_v9, %v61_v8  ;;  %s832_s10 = scalar_lea.vmem %s471_s9, 512  ;;  %p837_p11 = scmp.lt.s32.totalorder %s471_s9, %s471_s9 }
  0x3a   :  { %647 = vmatpush3.bf16.msra.mxu0 %v646_v5  ;;  %v76_v13 = vld [vmem:[#allocation7 + $0x38] sm:$0xff]  ;;  %v75_v15 = vld [vmem:[#allocation7 + $0x30] sm:$0xff]  ;;  %v78_v19 = vld [vmem:[#allocation7 + $0x60] sm:$0xff]  ;;  %v655_v27 = vpack.c.bf16 %v64_v12, %v63_v11  ;;  %p833_p10 = scmp.ne.s32.totalorder %s471_s9, %s832_s10  ;;  %p838_p12 = scmp.lt.s32.totalorder %s832_s10, %s832_s10 }
  0x3b   :  { %648 = vmatprep.subr.bf16.mxu0 %v865_v0  ;;  %v669_v17 = vpack.c.bf16 %v76_v13, %v74_v10  ;;  %v671_v18 = vpack.c.bf16 %v75_v15, %v73_v14  ;;  %v80_v20 = vld [vmem:[#allocation7 + $0x88] sm:$0xff]  ;;  %v77_v21 = vld [vmem:[#allocation7 + $0x58] sm:$0xff]  ;;  %v79_v23 = vld [vmem:[#allocation7 + $0x80] sm:$0xff] }
  0x3c   :  { %v673_v22 = vpack.c.bf16 %v80_v20, %v78_v19  ;;  %v82_v24 = vld [vmem:[#allocation7 + $0xb0] sm:$0xff]  ;;  %v84_v25 = vld [vmem:[#allocation7 + $0xd8] sm:$0xff]  ;;  %v675_v26 = vpack.c.bf16 %v79_v23, %v77_v21  ;;  %v65_v28 = vld [vmem:[#allocation7 + $0x140] sm:$0xff]  ;;  %p839_p13 = por %p838_p12, %p837_p11 }
  0x3d   :  { %670 = vmatprep.subr.bf16.mxu1 %v669_v17  ;;  %v677_v29 = vpack.c.bf16 %v84_v25, %v82_v24  ;;  %v81_v30 = vld [vmem:[#allocation7 + $0xa8] sm:$0xff]  ;;  %v83_v31 = vld [vmem:[#allocation7 + $0xd0] sm:$0xff]  ;;  %v86_v33 = vld [vmem:[#allocation7 + $0x100] sm:$0xff] }
  0x3e   :  { %650 = vmatpush3.bf16.msra.mxu0 %v649_v7  ;;  %672 = vmatpush1.bf16.msra.mxu1 %v671_v18  ;;  %v66_v32 = vld [vmem:[#allocation7 + $0x168] sm:$0xff]  ;;  %v679_v35 = vpack.c.bf16 %v83_v31, %v81_v30  ;;  %v67_v37 = vld [vmem:[#allocation7 + $0x190] sm:$0xff]  ;;  %v85_v39 = vld [vmem:[#allocation7 + $0xf8] sm:$0xff]  ;;  %p840_p0 = pnand %p839_p13, %p833_p10 }
  0x3f   :  { %651 = vmatprep.subr.bf16.mxu0 %v865_v0  ;;  %674 = vmatprep.subr.bf16.mxu1 %v673_v22  ;;  %v88_v34 = vld [vmem:[#allocation7 + $0x128] sm:$0xff]  ;;  %v658_v36 = vpack.c.bf16 %v66_v32, %v65_v28  ;;  %v87_v40 = vld [vmem:[#allocation7 + $0x120] sm:$0xff]  ;;  %v68_v41 = vld [vmem:[#allocation7 + $0x1b8] sm:$0xff] }
  0x40   :  { %v681_v38 = vpack.c.bf16 %v88_v34, %v86_v33  ;;  %v90_v42 = vld [vmem:[#allocation7 + $0x150] sm:$0xff]  ;;  %v92_v43 = vld [vmem:[#allocation7 + $0x178] sm:$0xff]  ;;  %v683_v44 = vpack.c.bf16 %v87_v40, %v85_v39  ;;  %v661_v45 = vpack.c.bf16 %v68_v41, %v67_v37  ;;  %v69_v46 = vld [vmem:[#allocation7 + $0x1e0] sm:$0xff] }
  0x41   :  { %v685_v47 = vpack.c.bf16 %v92_v43, %v90_v42  ;;  %v89_v48 = vld [vmem:[#allocation7 + $0x148] sm:$0xff]  ;;  %v91_v49 = vld [vmem:[#allocation7 + $0x170] sm:$0xff]  ;;  %v94_v51 = vld [vmem:[#allocation7 + $0x1a0] sm:$0xff] }
  0x42   :  { %653 = vmatpush3.bf16.msra.mxu0 %v652_v16  ;;  %676 = vmatpush1.bf16.msra.mxu1 %v675_v26  ;;  %v70_v50 = vld [vmem:[#allocation7 + $0x208] sm:$0xff]  ;;  %v687_v53 = vpack.c.bf16 %v91_v49, %v89_v48  ;;  %v71_v55 = vld [vmem:[#allocation7 + $0x230] sm:$0xff]  ;;  %v93_v57 = vld [vmem:[#allocation7 + $0x198] sm:$0xff] }
  0x43   :  { %654 = vmatprep.subr.bf16.mxu0 %v865_v0  ;;  %678 = vmatprep.subr.bf16.mxu1 %v677_v29  ;;  %v96_v52 = vld [vmem:[#allocation7 + $0x1c8] sm:$0xff]  ;;  %v664_v54 = vpack.c.bf16 %v70_v50, %v69_v46  ;;  %v95_v58 = vld [vmem:[#allocation7 + $0x1c0] sm:$0xff]  ;;  %v72_v59 = vld [vmem:[#allocation7 + $0x258] sm:$0xff] }
  0x44   :  { %v689_v56 = vpack.c.bf16 %v96_v52, %v94_v51  ;;  %v98_v60 = vld [vmem:[#allocation7 + $0x1f0] sm:$0xff]  ;;  %v100_v61 = vld [vmem:[#allocation7 + $0x218] sm:$0xff]  ;;  %v691_v62 = vpack.c.bf16 %v95_v58, %v93_v57  ;;  %v667_v63 = vpack.c.bf16 %v72_v59, %v71_v55  ;;  %v97_v3 = vld [vmem:[#allocation7 + $0x1e8] sm:$0xff] }
  0x45   :  { %v693_v2 = vpack.c.bf16 %v100_v61, %v98_v60  ;;  %v99_v4 = vld [vmem:[#allocation7 + $0x210] sm:$0xff]  ;;  %v102_v7 = vld [vmem:[#allocation7 + $0x240] sm:$0xff]  ;;  %v104_v8 = vld [vmem:[#allocation7 + $0x268] sm:$0xff] }
  0x46   :  { %656 = vmatpush3.bf16.msra.mxu0 %v655_v27  ;;  %680 = vmatpush1.bf16.msra.mxu1 %v679_v35  ;;  %v695_v5 = vpack.c.bf16 %v99_v4, %v97_v3  ;;  %v55_v6 = vld [vmem:[#allocation2] sm:$0xff]  ;;  %v697_v9 = vpack.c.bf16 %v104_v8, %v102_v7  ;;  %v101_v10 = vld [vmem:[#allocation7 + $0x238] sm:$0xff]  ;;  %v103_v11 = vld [vmem:[#allocation7 + $0x260] sm:$0xff] }
  0x47   :  { %657 = vmatprep.subr.bf16.mxu0 %v865_v0  ;;  %682 = vmatprep.subr.bf16.mxu1 %v681_v38  ;;  %v699_v12 = vpack.c.bf16 %v103_v11, %v101_v10  ;;  %v105_v13 = vld [vmem:[#allocation7 + $0x18] sm:$0xff]  ;;  %v106_v14 = vld [vmem:[#allocation7 + $0x40] sm:$0xff]  ;;  %v107_v15 = vld [vmem:[#allocation7 + $0x68] sm:$0xff] }
  0x48   :  { %v702_v16 = vpack.c.bf16 %v106_v14, %v105_v13  ;;  %v108_v17 = vld [vmem:[#allocation7 + $0x90] sm:$0xff]  ;;  %v109_v24 = vld [vmem:[#allocation7 + $0xb8] sm:$0xff]  ;;  %v110_v25 = vld [vmem:[#allocation7 + $0xe0] sm:$0xff] }
  0x49   :  { %v705_v18 = vpack.c.bf16 %v108_v17, %v107_v15  ;;  %v483_v19 = vld [vmem:[%s993_s3] ss:$0 sm:$0xff]  ;;  %v708_v26 = vpack.c.bf16 %v110_v25, %v109_v24  ;;  %v111_v27 = vld [vmem:[#allocation7 + $0x108] sm:$0xff]  ;;  %v113_v30 = vld [vmem:[#allocation7 + $0x158] sm:$0xff] }
  0x4a   :  { %659 = vmatpush3.bf16.msra.mxu0 %v658_v36  ;;  %684 = vmatpush1.bf16.msra.mxu1 %v683_v44  ;;  %v112_v28 = vld [vmem:[#allocation7 + $0x130] sm:$0xff]  ;;  %v114_v31 = vld [vmem:[#allocation7 + $0x180] sm:$0xff]  ;;  %v115_v33 = vld [vmem:[#allocation7 + $0x1a8] sm:$0xff] }
  0x4b   :  { %660 = vmatprep.subr.bf16.mxu0 %v865_v0  ;;  %686 = vmatprep.subr.bf16.mxu1 %v685_v47  ;;  %v711_v29 = vpack.c.bf16 %v112_v28, %v111_v27  ;;  %v714_v32 = vpack.c.bf16 %v114_v31, %v113_v30  ;;  %v116_v34 = vld [vmem:[#allocation7 + $0x1d0] sm:$0xff]  ;;  %v117_v35 = vld [vmem:[#allocation7 + $0x1f8] sm:$0xff]  ;;  %v118_v36 = vld [vmem:[#allocation7 + $0x220] sm:$0xff] }
  0x4c   :  { %v720_v37 = vpack.c.bf16 %v118_v36, %v117_v35  ;;  %v119_v38 = vld [vmem:[#allocation7 + $0x248] sm:$0xff]  ;;  %v120_v39 = vld [vmem:[#allocation7 + $0x270] sm:$0xff]  ;;  %v121_v41 = vld [vmem:[#allocation7 + $0x20] sm:$0xff] }
  0x4d   :  { %v723_v40 = vpack.c.bf16 %v120_v39, %v119_v38  ;;  %v122_v42 = vld [vmem:[#allocation7 + $0x48] sm:$0xff]  ;;  %v123_v43 = vld [vmem:[#allocation7 + $0x70] sm:$0xff]  ;;  %v125_v47 = vld [vmem:[#allocation7 + $0xc0] sm:$0xff] }
  0x4e   :  { %662 = vmatpush3.bf16.msra.mxu0 %v661_v45  ;;  %688 = vmatpush1.bf16.msra.mxu1 %v687_v53  ;;  %v726_v44 = vpack.c.bf16 %v122_v42, %v121_v41  ;;  %v124_v45 = vld [vmem:[#allocation7 + $0x98] sm:$0xff]  ;;  %v126_v48 = vld [vmem:[#allocation7 + $0xe8] sm:$0xff]  ;;  %v127_v50 = vld [vmem:[#allocation7 + $0x110] sm:$0xff] }
  0x4f   :  { %663 = vmatprep.subr.bf16.mxu0 %v865_v0  ;;  %690 = vmatprep.subr.bf16.mxu1 %v689_v56  ;;  %v729_v46 = vpack.c.bf16 %v124_v45, %v123_v43  ;;  %v732_v49 = vpack.c.bf16 %v126_v48, %v125_v47  ;;  %v128_v51 = vld [vmem:[#allocation7 + $0x138] sm:$0xff]  ;;  %v129_v53 = vld [vmem:[#allocation7 + $0x160] sm:$0xff]  ;;  %v131_v56 = vld [vmem:[#allocation7 + $0x1b0] sm:$0xff] }
  0x50   :  { %v735_v52 = vpack.c.bf16 %v128_v51, %v127_v50  ;;  %v132_v57 = vld [vmem:[#allocation7 + $0x1d8] sm:$0xff]  ;;  %v133_v59 = vld [vmem:[#allocation7 + $0x200] sm:$0xff]  ;;  %v134_v60 = vld [vmem:[#allocation7 + $0x228] sm:$0xff] }
  0x51   :  { %v741_v58 = vpack.c.bf16 %v132_v57, %v131_v56  ;;  %v744_v61 = vpack.c.bf16 %v134_v60, %v133_v59  ;;  %v56_v8 = vld [vmem:[#allocation5] sm:$0xff]  ;;  %v135_v11 = vld [vmem:[#allocation7 + $0x250] sm:$0xff] }
  0x52   :  { %665 = vmatpush3.bf16.msra.mxu0 %v664_v54  ;;  %692 = vmatpush1.bf16.msra.mxu1 %v691_v62  ;;  %v130_v54 = vld [vmem:[#allocation7 + $0x188] sm:$0xff]  ;;  %v484_v62 = vld [vmem:[%s993_s3 + $0x1] ss:$0 sm:$0xff]  ;;  %v486_v14 = vld [vmem:[%s993_s3 + $0x3] ss:$0 sm:$0xff] }
  0x53   :  { %666 = vmatprep.subr.bf16.mxu0 %v865_v0  ;;  %694 = vmatprep.subr.bf16.mxu1 %v693_v2  ;;  %v738_v55 = vpack.c.bf16 %v130_v54, %v129_v53 }
  0x56   :  { %668 = vmatpush3.bf16.msra.mxu0 %v667_v63  ;;  %696 = vmatpush1.bf16.msra.mxu1 %v695_v5  ;;  %v485_v63 = vld [vmem:[%s993_s3 + $0x2] ss:$0 sm:$0xff] }
  0x57   :  { %701 = vmatprep.subr.bf16.mxu0 %v865_v0  ;;  %698 = vmatprep.subr.bf16.mxu1 %v697_v9 }
  0x59   :  { %573 = vmatmul.mubr.f32.vlgmr.msra.gmra.mrb[0].mxu0 %v55_v6 }
  0x5a   :  { %607 = vmatprep.mubr.msk.f32.mxu0 %vm866_vm0, %v867_v1  ;;  %700 = vmatpush1.bf16.msra.mxu1 %v699_v12  ;;  %v136_v12 = vld [vmem:[#allocation7 + $0x278] sm:$0xff] }
  0x5b   :  { %725 = vmatprep.subr.bf16.mxu1 %v865_v0  ;;  %703 = vmatpush3.bf16.msra.mxu0 %v702_v16  ;;  %v747_v13 = vpack.c.bf16 %v136_v12, %v135_v11 }
  0x5c   :  { %704 = vmatprep.subr.bf16.mxu0 %v865_v0 }
  0x5f   :  { %706 = vmatpush3.bf16.msra.mxu0 %v705_v18 }
  0x60   :  { %707 = vmatprep.subr.bf16.mxu0 %v865_v0 }
  0x63   :  { %709 = vmatpush3.bf16.msra.mxu0 %v708_v26 }
  0x64   :  { %710 = vmatprep.subr.bf16.mxu0 %v865_v0 }
  0x67   :  { %712 = vmatpush3.bf16.msra.mxu0 %v711_v29 }
  0x68   :  { %713 = vmatprep.subr.bf16.mxu0 %v865_v0 }
  0x6b   :  { %715 = vmatpush3.bf16.msra.mxu0 %v714_v32 }
  0x6c   :  { %716 = vmatprep.subr.bf16.mxu0 %v865_v0 }
 0x12c   :  { %v212_v20 = vpop.f32.mrb[0].mxu0 }
 0x12d   :  { %v213_v21 = vadd.f32 %v483_v19, %v212_v20  ;;  %v574_v22 = vpop.f32.mrb[1].mxu0  ;;  %v487_v19 = vld [vmem:[%s993_s3 + $0x4] ss:$0 sm:$0xff] }
 0x12f   :  { %v216_v23 = vmax.f32 %v213_v21, 0.0 }
 0x131   :  { %282 = vmatmul.mubr.f32.vlgmr.msra.gmra.mrb[0].mxu1 %v216_v23 }
 0x132   :  { %642 = vmatprep.mubr.msk.f32.mxu1 %vm866_vm0, %v867_v1  ;;  %v717_v1 = vpack.c.bf16 %v116_v34, %v115_v33  ;;  %727 = vmatpush3.bf16.msra.mxu1 %v726_v44 }
 0x133   :  { %728 = vmatprep.subr.bf16.mxu1 %v865_v0 }
 0x134   :  { %718 = vmatpush3.bf16.msra.mxu0 %v717_v1 }
 0x135   :  { %719 = vmatprep.subr.bf16.mxu0 %v865_v0 }
 0x136   :  { %730 = vmatpush3.bf16.msra.mxu1 %v729_v46 }
 0x137   :  { %731 = vmatprep.subr.bf16.mxu1 %v865_v0 }
 0x138   :  { %721 = vmatpush3.bf16.msra.mxu0 %v720_v37 }
 0x139   :  { %722 = vmatprep.subr.bf16.mxu0 %v865_v0 }
 0x13a   :  { %733 = vmatpush3.bf16.msra.mxu1 %v732_v49 }
 0x13b   :  { %734 = vmatprep.subr.bf16.mxu1 %v865_v0 }
 0x13c   :  { %724 = vmatpush3.bf16.msra.mxu0 %v723_v40 }
 0x13e   :  { %736 = vmatpush3.bf16.msra.mxu1 %v735_v52 }
 0x13f   :  { %737 = vmatprep.subr.bf16.mxu1 %v865_v0 }
 0x142   :  { %739 = vmatpush3.bf16.msra.mxu1 %v738_v55 }
 0x143   :  { %740 = vmatprep.subr.bf16.mxu1 %v865_v0 }
 0x146   :  { %742 = vmatpush3.bf16.msra.mxu1 %v741_v58 }
 0x147   :  { %743 = vmatprep.subr.bf16.mxu1 %v865_v0 }
 0x14a   :  { %745 = vmatpush3.bf16.msra.mxu1 %v744_v61 }
 0x14b   :  { %746 = vmatprep.subr.bf16.mxu1 %v865_v0 }
 0x14e   :  { %748 = vmatpush3.bf16.msra.mxu1 %v747_v13 }
 0x204   :  { %v283_v2 = vpop.f32.mrb[0].mxu1 }
 0x205   :  { %v292_v3 = vadd.f32 %v484_v62, %v283_v2  ;;  %v285_v4 = vpop.f32.mrb[1].mxu1 }
 0x206   :  { %v297_v5 = vadd.f32 %v485_v63, %v285_v4 }
 0x207   :  { %460 = vst [vmem:[#allocation8 + $0x8] sm:$0xff] %v292_v3 }
 0x208   :  { %v298_v6 = vmul.f32 0.5, %v297_v5  ;;  %462 = vst [vmem:[#allocation8 + $0x10] sm:$0xff] %v297_v5 }
 0x20a   :  { %v299_v7 = vmul.f32 1.442695, %v298_v6 }
 0x20c   :  { %760 = vpow2.f32 %v299_v7 }
 0x216   :  { %v761_v9 = vpop.eup %760 }
 0x217   :  { %v301_v0 = vmul.f32 %v761_v9, %v56_v8 }
 0x219   :  { %v302_v10 = vadd.f32 %v301_v0, %v292_v3 }
 0x21b   :  { %608 = vmatmul.mubr.f32.vlgmr.msra.gmra.mrb[2].mxu0 %v302_v10  ;;  %464 = vst [vmem:[#allocation8 + $0x18] sm:$0xff] %v302_v10 }
 0x2ee   :  { %v373_v15 = vpop.f32.mrb[2].mxu0 }
 0x2ef   :  { %v374_v16 = vadd.f32 %v486_v14, %v373_v15  ;;  %v609_v17 = vpop.f32.mrb[3].mxu0 }
 0x2f1   :  { %v377_v18 = vmax.f32 %v374_v16, 0.0 }
 0x2f3   :  { %643 = vmatmul.mubr.f32.vlgmr.msra.gmra.mrb[2].mxu1 %v377_v18 }
 0x3c6   :  { %v448_v20 = vpop.f32.mrb[2].mxu1 }
 0x3c7   :  { %v449_v21 = vadd.f32 %v487_v19, %v448_v20  ;;  %v644_v22 = vpop.f32.mrb[3].mxu1 }
 0x3c9   :  { %v488_v23 = vmul.f32 -1.442695, %v449_v21 }
 0x3cb   :  { %762 = vpow2.f32 %v488_v23 }
 0x3d5   :  { %v763_v24 = vpop.eup %762 }
 0x3d6   :  { %v455_v25 = vadd.f32 1.0, %v763_v24 }
 0x3d8   :  { %764 = vrcp.f32 %v455_v25 }
 0x3e2   :  { %v765_v26 = vpop.eup %764 }
 0x3e3   :  { %458 = vst [vmem:[#allocation8] sm:$0xff] %v765_v26 }
 0x3e4   :  { %843 = shalt.err (!%p840_p0)
}
 0x3e5   :  { %s844_s11 = scalar_lea.hbm %s994_s4, 512 }
 0x3e6   :  { %p845_p1 = scmp.ne.s32.totalorder %s994_s4, %s844_s11  ;;  %p848_p2 = scmp.lt.u32.totalorder %s844_s11, %s994_s4 }
 0x3e8   :  { %p850_p3 = pnand %p848_p2, %p845_p1 }
 0x3ea   :  { %853 = shalt.err (!%p850_p3)
}
 0x3eb   :  { %s869_s16 = smov 128   ;;  %s870_s17 = smov 8  }
 0x3ec   :  { %476 = dma.vmem_to_hbm [thread:$0]  %s471_s9, 512, %s994_s4, [#allocation4], %s869_s16, %s869_s16, %s870_s17  }
 0x3ed   :  { %858 = dma.done.wait [#allocation4], 512  }
 0x3ee   :  { %859 = vsyncadd [#allocation4], 4294966784 }
 0x3ef   :  { %480 = vsyncpa [#allocation3], 1 }
 0x3f0   :  { %481 = vsyncpa [#allocation6], 1 }
 0x3f1   :  { %482 = vsyncpa [#allocation4], 1 }

</bundles_post_ra>
